<compile_context>
chip_gen: v7x
topology: tpu7x:2x2x1
jax: 0.10.0
libtpu: 0.0.40
codegen_flags: <defaults>
</compile_context>

<pallas_src>
import functools
import math

import jax
import jax.numpy as jnp
from jax import lax
from jax.experimental import pallas as pl
from jax.experimental.pallas import tpu as pltpu


def _round_up(x, m):
    return ((x + m - 1) // m) * m


def _pick_tile(dim, prefs):
    """Largest preferred tile that evenly divides `dim`, else the full dim."""
    for p in prefs:
        if p <= dim and dim % p == 0:
            return p
    return dim


# ----------------------------------------------------------------------------
# Kernel 1: tiled dense linear layer  (x @ W^T + b)  with fp32 accumulation.
# ----------------------------------------------------------------------------
def _linear_kernel(x_ref, w_ref, b_ref, o_ref, acc_ref, *, mxu_dtype):
    k = pl.program_id(2)

    @pl.when(k == 0)
    def _init():
        # Fold the bias straight into the accumulator: no epilogue pass.
        acc_ref[...] = jnp.broadcast_to(
            b_ref[...].astype(jnp.float32), acc_ref.shape)

    x = x_ref[...].astype(mxu_dtype)          # (tm, tk)
    w = w_ref[...].astype(mxu_dtype)          # (tn, tk)  (PyTorch layout)
    acc_ref[...] += lax.dot_general(
        x, w,
        dimension_numbers=(((1,), (1,)), ((), ())),   # contract K of both
        preferred_element_type=jnp.float32)

    @pl.when(k == pl.num_programs(2) - 1)
    def _store():
        o_ref[...] = acc_ref[...].astype(o_ref.dtype)


def pallas_linear(x2d, w, b, *, mxu_dtype=jnp.bfloat16):
    """x2d: (M, K), w: (N, K) (nn.Linear layout), b: (N,)  ->  (M, N)."""
    M, K = x2d.shape
    N = w.shape[0]
    tm = _pick_tile(M, (256, 128, 64, 32, 16, 8))
    tn = _pick_tile(N, (256, 128))
    tk = _pick_tile(K, (512, 256, 128))
    b2 = jnp.asarray(b, x2d.dtype).reshape(1, N)
    grid = (M // tm, N // tn, K // tk)
    kernel = functools.partial(_linear_kernel, mxu_dtype=mxu_dtype)
    return pl.pallas_call(
        kernel,
        out_shape=jax.ShapeDtypeStruct((M, N), x2d.dtype),
        grid_spec=pltpu.PrefetchScalarGridSpec(
            num_scalar_prefetch=0,
            grid=grid,
            in_specs=[
                pl.BlockSpec((tm, tk), lambda i, j, k: (i, k)),
                pl.BlockSpec((tn, tk), lambda i, j, k: (j, k)),
                pl.BlockSpec((1, tn), lambda i, j, k: (0, j)),
            ],
            out_specs=pl.BlockSpec((tm, tn), lambda i, j, k: (i, j)),
            scratch_shapes=[pltpu.VMEM((tm, tn), jnp.float32)],
        ),
        compiler_params=pltpu.CompilerParams(
            dimension_semantics=("parallel", "parallel", "arbitrary")),
    )(x2d, jnp.asarray(w), b2)


# ----------------------------------------------------------------------------
# Kernel 2: flash-style causal attention with online softmax.
#   q, k, v laid out as (B*H, T, D); grid = (B*H, T/tile, T/tile).
# ----------------------------------------------------------------------------
def _flash_attn_kernel(q_ref, k_ref, v_ref, o_ref, m_sc, l_sc, acc_sc,
                       *, scale, mxu_dtype, approx_recip):
    qi = pl.program_id(1)
    ki = pl.program_id(2)

    @pl.when(ki == 0)
    def _init():
        m_sc[...] = jnp.full_like(m_sc, -jnp.inf)
        l_sc[...] = jnp.zeros_like(l_sc)
        acc_sc[...] = jnp.zeros_like(acc_sc)

    # Causal block skipping: kv blocks strictly above the diagonal contribute
    # nothing to this q tile -> skip their compute entirely.
    @pl.when(ki <= qi)
    def _compute():
        q = (q_ref[0].astype(jnp.float32) * scale).astype(mxu_dtype)  # (tq, D)
        k = k_ref[0].astype(mxu_dtype)                                # (tk, D)
        # Contract head dim of both operands: no explicit K transpose.
        s = lax.dot_general(
            q, k,
            dimension_numbers=(((1,), (1,)), ((), ())),
            preferred_element_type=jnp.float32)                       # (tq, tk)

        # Mask only matters on the diagonal block (tq == tk); below-diagonal
        # blocks pass through untouched.
        row = lax.broadcasted_iota(jnp.int32, s.shape, 0)
        col = lax.broadcasted_iota(jnp.int32, s.shape, 1)
        s = jnp.where((ki < qi) | (col <= row), s, -jnp.inf)

        m_prev = m_sc[...]
        m_new = jnp.maximum(m_prev, jnp.max(s, axis=-1, keepdims=True))
        alpha = jnp.exp(m_prev - m_new)
        p = jnp.exp(s - m_new)
        l_sc[...] = alpha * l_sc[...] + jnp.sum(p, axis=-1, keepdims=True)
        acc_sc[...] = alpha * acc_sc[...] + jnp.dot(
            p.astype(mxu_dtype), v_ref[0].astype(mxu_dtype),
            preferred_element_type=jnp.float32)
        m_sc[...] = m_new

    # The diagonal block is the last kv block that contributes to this q tile.
    @pl.when(ki == qi)
    def _finalize():
        inv_l = pl.reciprocal(l_sc[...], approx=approx_recip)
        o_ref[0] = (acc_sc[...] * inv_l).astype(o_ref.dtype)


def pallas_flash_attention(q, k, v, *, mxu_dtype=jnp.bfloat16):
    """q, k, v: (B*H, T, D) -> (B*H, T, D), causal softmax(q k^T / sqrt(D)) v."""
    BH, T, D = q.shape
    scale = 1.0 / math.sqrt(D)

    tile = 128 if T >= 128 else _round_up(T, 8)
    T_pad = _round_up(T, tile)
    if T_pad != T:
        pad = ((0, 0), (0, T_pad - T), (0, 0))
        q, k, v = jnp.pad(q, pad), jnp.pad(k, pad), jnp.pad(v, pad)
    nblk = T_pad // tile

    approx = mxu_dtype != jnp.float32
    kernel = functools.partial(
        _flash_attn_kernel, scale=scale, mxu_dtype=mxu_dtype,
        approx_recip=approx)

    q_spec = pl.BlockSpec((1, tile, D), lambda bh, qi, ki: (bh, qi, 0))
    # KV blocks above the diagonal are never used (compute is skipped), so the
    # index map clamps to the diagonal block and the resident buffer is reused.
    kv_spec = pl.BlockSpec((1, tile, D),
                           lambda bh, qi, ki: (bh, jnp.minimum(ki, qi), 0))

    out = pl.pallas_call(
        kernel,
        out_shape=jax.ShapeDtypeStruct((BH, T_pad, D), q.dtype),
        grid_spec=pltpu.PrefetchScalarGridSpec(
            num_scalar_prefetch=0,
            grid=(BH, nblk, nblk),
            in_specs=[q_spec, kv_spec, kv_spec],
            out_specs=q_spec,
            scratch_shapes=[
                pltpu.VMEM((tile, 1), jnp.float32),   # running max m
                pltpu.VMEM((tile, 1), jnp.float32),   # running sum l
                pltpu.VMEM((tile, D), jnp.float32),   # output accumulator
            ],
        ),
        compiler_params=pltpu.CompilerParams(
            dimension_semantics=("parallel", "parallel", "arbitrary")),
    )(q, k, v)
    if T_pad != T:
        out = out[:, :T, :]
    return out


# ----------------------------------------------------------------------------
# Module wrapper: CausalSelfAttention forward pass.
# ----------------------------------------------------------------------------
def causal_self_attention(x, params, n_head, *, mxu_dtype=jnp.bfloat16):
    """x: (B, T, C) float32."""
    B, T, C = x.shape
    D = C // n_head

    # qkv projection (tiled Pallas matmul).
    qkv = pallas_linear(x.reshape(B * T, C), params["w_attn"],
                        params["b_attn"], mxu_dtype=mxu_dtype)
    # (B, T, 3, H, D) -> (3, B, H, T, D); single XLA transpose.
    # TODO(synk): when D % 128 == 0 the q/k/v head slices could be indexed
    # directly out of the (B, T, 3C) projection via BlockSpec index_maps,
    # eliminating this HBM round-trip (and the one after attention).
    qkv = qkv.reshape(B, T, 3, n_head, D).transpose(2, 0, 3, 1, 4)
    q = qkv[0].reshape(B * n_head, T, D)
    k = qkv[1].reshape(B * n_head, T, D)
    v = qkv[2].reshape(B * n_head, T, D)

    # Causal flash attention; attn_dropout is identity (p = 0 / inference).
    y = pallas_flash_attention(q, k, v, mxu_dtype=mxu_dtype)

    # (B*H, T, D) -> (B, T, C)
    y = y.reshape(B, n_head, T, D).transpose(0, 2, 1, 3).reshape(B, T, C)

    # output projection (tiled Pallas matmul); resid_dropout is identity.
    out = pallas_linear(y.reshape(B * T, C), params["w_proj"],
                        params["b_proj"], mxu_dtype=mxu_dtype)
    return out.reshape(B, T, C)


# ----------------------------------------------------------------------------
# Pure-JAX reference for correctness check.
# ----------------------------------------------------------------------------
def reference(x, params, n_head):
    B, T, C = x.shape
    D = C // n_head
    qkv = x @ params["w_attn"].T + params["b_attn"]
    q, k, v = jnp.split(qkv, 3, axis=2)
    q = q.reshape(B, T, n_head, D).transpose(0, 2, 1, 3)
    k = k.reshape(B, T, n_head, D).transpose(0, 2, 1, 3)
    v = v.reshape(B, T, n_head, D).transpose(0, 2, 1, 3)
    att = jnp.einsum("bhqd,bhkd->bhqk", q, k) / math.sqrt(D)
    mask = jnp.tril(jnp.ones((T, T), dtype=bool))
    att = jnp.where(mask[None, None], att, -jnp.inf)
    att = jax.nn.softmax(att, axis=-1)
    y = jnp.einsum("bhqk,bhkd->bhqd", att, v)
    y = y.transpose(0, 2, 1, 3).reshape(B, T, C)
    return y @ params["w_proj"].T + params["b_proj"]


if __name__ == "__main__":
    # Small config consistent with the module: n_embd=32, n_head=4, bias=True,
    # dropout=0.0, block_size >= T.
    B, T, C, n_head = 2, 8, 32, 4

    key = jax.random.PRNGKey(0)
    kx, kw1, kb1, kw2, kb2 = jax.random.split(key, 5)

    x = jax.random.normal(kx, (B, T, C), dtype=jnp.float32)

    bound1 = 1.0 / math.sqrt(C)
    params = {
        "w_attn": jax.random.uniform(kw1, (3 * C, C), jnp.float32, -bound1, bound1),
        "b_attn": jax.random.uniform(kb1, (3 * C,), jnp.float32, -bound1, bound1),
        "w_proj": jax.random.uniform(kw2, (C, C), jnp.float32, -bound1, bound1),
        "b_proj": jax.random.uniform(kb2, (C,), jnp.float32, -bound1, bound1),
    }

    ref = reference(x, params, n_head)

    # Exact-precision path (f32 MXU operands): tight tolerance.
    out_f32 = causal_self_attention(x, params, n_head, mxu_dtype=jnp.float32)
    out_f32 = jax.block_until_ready(out_f32)
    assert out_f32.shape == (B, T, C)
    assert jnp.allclose(out_f32, ref, atol=1e-4, rtol=1e-4), "f32 mismatch"

    # Performance path (bf16 MXU operands, fp32 accumulation / softmax stats).
    out_bf16 = causal_self_attention(x, params, n_head, mxu_dtype=jnp.bfloat16)
    out_bf16 = jax.block_until_ready(out_bf16)
    assert out_bf16.shape == (B, T, C)
    assert jnp.allclose(out_bf16, ref, atol=5e-2, rtol=5e-2), "bf16 mismatch"

    # TODO(synk): training-mode dropout (attn_dropout / resid_dropout) not
    # implemented; inference semantics (p=0) only.
    print("KERNEL_OK")
</pallas_src>

<mosaic_0001>
module attributes {stable_mosaic.version = 11 : i64} {
  func.func @_linear_kernel(%arg0: i32, %arg1: i32, %arg2: i32, %arg3: memref<16x32xf32, #tpu.memory_space<vmem>>, %arg4: memref<96x32xf32, #tpu.memory_space<vmem>>, %arg5: memref<1x96xf32, #tpu.memory_space<vmem>>, %arg6: memref<16x96xf32, #tpu.memory_space<vmem>>, %arg7: memref<16x96xf32, #tpu.memory_space<vmem>>) attributes {dimension_semantics = [#tpu.dimension_semantics<parallel>, #tpu.dimension_semantics<parallel>, #tpu.dimension_semantics<arbitrary>], iteration_bounds = array<i64: 1, 1, 1>, scalar_prefetch = 0 : i64, scratch_operands = 1 : i64, tpu.core_type = #tpu.core_type<tc>, window_params = [{transform_indices = @transform_0, window_bounds = array<i64: 16, 32>}, {transform_indices = @transform_1, window_bounds = array<i64: 96, 32>}, {transform_indices = @transform_2, window_bounds = array<i64: 1, 96>}, {transform_indices = @transform_3, window_bounds = array<i64: 16, 96>}]} {
    %c0_i32 = arith.constant 0 : i32
    %0 = arith.cmpi eq, %arg2, %c0_i32 : i32
    %1 = arith.extui %0 : i1 to i32
    %c0_i32_0 = arith.constant 0 : i32
    %2 = arith.cmpi ne, %1, %c0_i32_0 : i32
    scf.if %2 {
      %c0_10 = arith.constant 0 : index
      %c0_11 = arith.constant 0 : index
      %12 = vector.load %arg5[%c0_10, %c0_11] : memref<1x96xf32, #tpu.memory_space<vmem>>, vector<1x96xf32>
      %13 = vector.shape_cast %12 : vector<1x96xf32> to vector<1x96xf32>
      %14 = vector.broadcast %13 : vector<1x96xf32> to vector<16x96xf32>
      %c0_12 = arith.constant 0 : index
      %c0_13 = arith.constant 0 : index
      %15 = vector.load %arg7[%c0_12, %c0_13] : memref<16x96xf32, #tpu.memory_space<vmem>>, vector<16x96xf32>
      tpu.vector_store %arg7[%c0_12, %c0_13], %14 {strides = array<i32>} : memref<16x96xf32, #tpu.memory_space<vmem>>, vector<16x96xf32>,
    } else {
    }
    %c0 = arith.constant 0 : index
    %c0_1 = arith.constant 0 : index
    %3 = vector.load %arg3[%c0, %c0_1] : memref<16x32xf32, #tpu.memory_space<vmem>>, vector<16x32xf32>
    %c0_2 = arith.constant 0 : index
    %c0_3 = arith.constant 0 : index
    %4 = vector.load %arg4[%c0_2, %c0_3] : memref<96x32xf32, #tpu.memory_space<vmem>>, vector<96x32xf32>
    %c0_4 = arith.constant 0 : index
    %c0_5 = arith.constant 0 : index
    %5 = vector.load %arg7[%c0_4, %c0_5] : memref<16x96xf32, #tpu.memory_space<vmem>>, vector<16x96xf32>
    %cst = arith.constant dense<0.000000e+00> : vector<16x96xf32>
    %6 = tpu.matmul %3, %4, %cst {dimension_numbers = #tpu.dot_dimension_numbers<[1], [1], [0], [0], [0, 0, 1, 0], [], []>} : vector<16x32xf32>, vector<96x32xf32>, vector<16x96xf32> -> vector<16x96xf32>
    %7 = arith.addf %5, %6 : vector<16x96xf32>
    %c0_6 = arith.constant 0 : index
    %c0_7 = arith.constant 0 : index
    %8 = vector.load %arg7[%c0_6, %c0_7] : memref<16x96xf32, #tpu.memory_space<vmem>>, vector<16x96xf32>
    tpu.vector_store %arg7[%c0_6, %c0_7], %7 {strides = array<i32>} : memref<16x96xf32, #tpu.memory_space<vmem>>, vector<16x96xf32>,
    %c0_i32_8 = arith.constant 0 : i32
    %9 = arith.cmpi eq, %arg2, %c0_i32_8 : i32
    %10 = arith.extui %9 : i1 to i32
    %c0_i32_9 = arith.constant 0 : i32
    %11 = arith.cmpi ne, %10, %c0_i32_9 : i32
    scf.if %11 {
      %c0_10 = arith.constant 0 : index
      %c0_11 = arith.constant 0 : index
      %12 = vector.load %arg7[%c0_10, %c0_11] : memref<16x96xf32, #tpu.memory_space<vmem>>, vector<16x96xf32>
      %c0_12 = arith.constant 0 : index
      %c0_13 = arith.constant 0 : index
      %13 = vector.load %arg6[%c0_12, %c0_13] : memref<16x96xf32, #tpu.memory_space<vmem>>, vector<16x96xf32>
      tpu.vector_store %arg6[%c0_12, %c0_13], %12 {strides = array<i32>} : memref<16x96xf32, #tpu.memory_space<vmem>>, vector<16x96xf32>,
    } else {
    }
    return
  }
  func.func @transform_0(%arg0: i32, %arg1: i32, %arg2: i32) -> (i32, i32) {
    %c0_i32 = arith.constant 0 : i32
    return %arg0, %arg2 : i32, i32
  }
  func.func @transform_1(%arg0: i32, %arg1: i32, %arg2: i32) -> (i32, i32) {
    %c0_i32 = arith.constant 0 : i32
    return %arg1, %arg2 : i32, i32
  }
  func.func @transform_2(%arg0: i32, %arg1: i32, %arg2: i32) -> (i32, i32) {
    %c0_i32 = arith.constant 0 : i32
    %c0_i32_0 = arith.constant 0 : i32
    return %c0_i32, %arg1 : i32, i32
  }
  func.func @transform_3(%arg0: i32, %arg1: i32, %arg2: i32) -> (i32, i32) {
    %c0_i32 = arith.constant 0 : i32
    return %arg0, %arg1 : i32, i32
  }
}

</mosaic_0001>

<bundles_post_ra>
// kernel: tpu_custom_call.1
= control target key start
LH: loop header
LB: loop body
LE: loop exit
PB: predicated region body
PF: predicated region fallthrough
CT: control target
= control target key end

     0   :  { %vm45_vm0 = vcmask 261120   ;;  %vm26_vm2 = vcmask 785408   ;;  %s428_s0 = inlined_call_operand.vmem [shape: f32[16,32], index: 0, kind: input, shape index: {}]   ;;  %s429_s1 = inlined_call_operand.vmem [shape: f32[96,32], index: 1, kind: input, shape index: {}]   ;;  %s430_s2 = inlined_call_operand.vmem [shape: f32[1,96], index: 2, kind: input, shape index: {}]   ;;  %s431_s3 = inlined_call_operand.hbm [shape: f32[16,96], index: 3, kind: output, shape index: {}]  }
   0x1   :  { %v31_v0 = vld [vmem:[%s429_s1] sm:$0xff]  ;;  %v32_v1 = vld [vmem:[%s429_s1 + $0x8] sm:$0xff]  ;;  %v33_v2 = vld [vmem:[%s429_s1 + $0x10] sm:$0xff] }
   0x2   :  { %v247_v3 = vpack.c.bf16 %v32_v1, %v31_v0  ;;  %vm344_vm1 = vmpackc.low %vm45_vm0, %vm45_vm0  ;;  %v34_v5 = vld [vmem:[%s429_s1 + $0x18] sm:$0xff]  ;;  %v29_v7 = vld [vmem:[%s428_s0] sm:$0xff] }
   0x3   :  { %v253_v6 = vpack.c.bf16 %v34_v5, %v33_v2  ;;  %244 = vmatprep.mubr.msk.f32.mxu0 %vm45_vm0, %v29_v7  ;;  %v191_v8 = vld [vmem:[%s430_s2] ss:$0 sm:$0xff] }
   0x4   :  { %249 = vmatprep.subr.msk.bf16.mxu0 %vm344_vm1, %v247_v3 }
   0x5   :  { %252 = vmatpush3.bf16.xpose.msk.msra.mxu0 %vm344_vm1, %v247_v3 }
   0x6   :  { %255 = vmatprep.subr.msk.bf16.mxu0 %vm344_vm1, %v253_v6 }
   0x7   :  { %8 = vsyncpa [#allocation4], 0  ;;  %v35_v9 = vld [vmem:[%s429_s1 + $0x20] sm:$0xff]  ;;  %v36_v10 = vld [vmem:[%s429_s1 + $0x28] sm:$0xff]  ;;  %28 = vst.msk [vmem:[#allocation2 + $0x8] sm:$0xff] %vm26_vm2, %v191_v8 }
   0x8   :  { %27 = vst.msk [vmem:[#allocation2] sm:$0xff] %vm26_vm2, %v191_v8  ;;  %v259_v11 = vpack.c.bf16 %v36_v10, %v35_v9  ;;  %v37_v12 = vld [vmem:[%s429_s1 + $0x30] sm:$0xff]  ;;  %v38_v13 = vld [vmem:[%s429_s1 + $0x38] sm:$0xff]  ;;  %v39_v15 = vld [vmem:[%s429_s1 + $0x40] sm:$0xff] }
   0x9   :  { %v265_v14 = vpack.c.bf16 %v38_v13, %v37_v12  ;;  %v40_v16 = vld [vmem:[%s429_s1 + $0x48] sm:$0xff]  ;;  %v41_v18 = vld [vmem:[%s429_s1 + $0x50] sm:$0xff]  ;;  %v42_v19 = vld [vmem:[%s429_s1 + $0x58] sm:$0xff]  ;;  %s310_s1 = smov [#allocation3]  }
   0xa   :  { %v271_v17 = vpack.c.bf16 %v40_v16, %v39_v15  ;;  %v277_v20 = vpack.c.bf16 %v42_v19, %v41_v18  ;;  %v30_v21 = vld [vmem:[%s428_s0 + $0x8] sm:$0xff]  ;;  %s180_s14 = sshll.u32 %s310_s1, 4  ;;  %s181_s14 = int_to_ptr.vmem [resolvable:$true] %s180_s14 }
   0xb   :  { %s286_s0 = scalar_lea.vmem %s181_s14, 256  ;;  %p291_p1 = scmp.lt.s32.totalorder %s181_s14, %s181_s14 }
   0xc   :  { %p287_p0 = scmp.ne.s32.totalorder %s181_s14, %s286_s0  ;;  %p292_p2 = scmp.lt.s32.totalorder %s286_s0, %s286_s0 }
   0xd   :  { %258 = vmatpush3.bf16.xpose.msk.msra.mxu0 %vm344_vm1, %v253_v6 }
   0xe   :  { %261 = vmatprep.subr.msk.bf16.mxu0 %vm344_vm1, %v259_v11  ;;  %v44_v22 = vld [vmem:[#allocation2 + $0x8] sm:$0xff]  ;;  %p293_p3 = por %p292_p2, %p291_p1 }
   0xf   :  { %v43_v23 = vld [vmem:[#allocation2] sm:$0xff] }
  0x10   :  { %p294_p4 = pnand %p293_p3, %p287_p0 }
  0x15   :  { %264 = vmatpush3.bf16.xpose.msk.msra.mxu0 %vm344_vm1, %v259_v11 }
  0x16   :  { %267 = vmatprep.subr.msk.bf16.mxu0 %vm344_vm1, %v265_v14 }
  0x1d   :  { %270 = vmatpush3.bf16.xpose.msk.msra.mxu0 %vm344_vm1, %v265_v14 }
  0x1e   :  { %273 = vmatprep.subr.msk.bf16.mxu0 %vm344_vm1, %v271_v17 }
  0x25   :  { %276 = vmatpush3.bf16.xpose.msk.msra.mxu0 %vm344_vm1, %v271_v17 }
  0x26   :  { %279 = vmatprep.subr.msk.bf16.mxu0 %vm344_vm1, %v277_v20 }
  0x2d   :  { %282 = vmatpush3.bf16.xpose.msk.msra.mxu0 %vm344_vm1, %v277_v20 }
  0x34   :  { %245 = vmatmul.mubr.msk.f32.vlgmr.msra.gmra.mrb[0].mxu0 %vm45_vm0, %v30_v21 }
 0x107   :  { %v246_v24 = vpop.f32.mrb[0].mxu0 }
 0x108   :  { %v164_v25 = vadd.f32 %v246_v24, %v44_v22  ;;  %v154_v26 = vpop.f32.mrb[1].mxu0 }
 0x109   :  { %v163_v27 = vadd.f32 %v154_v26, %v43_v23 }
 0x10a   :  { %167 = vst.msk [vmem:[#allocation2 + $0x8] sm:$0xff] %vm26_vm2, %v164_v25 }
 0x10b   :  { %166 = vst.msk [vmem:[#allocation2] sm:$0xff] %vm26_vm2, %v163_v27 }
 0x111   :  { %v172_v28 = vld [vmem:[#allocation2 + $0x8] sm:$0xff] }
 0x112   :  { %v171_v29 = vld [vmem:[#allocation2] sm:$0xff]  ;;  %174 = vst.msk [vmem:[#allocation3 + $0x8] sm:$0xff] %vm26_vm2, %v172_v28 }
 0x113   :  { %173 = vst.msk [vmem:[#allocation3] sm:$0xff] %vm26_vm2, %v171_v29 }
 0x114   :  { %297 = shalt.err (!%p294_p4)
}
 0x115   :  { %s298_s17 = scalar_lea.hbm %s431_s3, 256 }
 0x116   :  { %p299_p5 = scmp.ne.s32.totalorder %s431_s3, %s298_s17  ;;  %p302_p6 = scmp.lt.u32.totalorder %s298_s17, %s431_s3 }
 0x118   :  { %p304_p7 = pnand %p302_p6, %p299_p5 }
 0x11a   :  { %307 = shalt.err (!%p304_p7)
}
 0x11b   :  { %s311_s22 = smov 128   ;;  %s312_s23 = smov 8  }
 0x11c   :  { %186 = dma.vmem_to_hbm [thread:$0]  %s181_s14, 256, %s431_s3, [#allocation4], %s311_s22, %s311_s22, %s312_s23  }
 0x11d   :  { %308 = dma.done.wait [#allocation4], 256  }
 0x11e   :  { %309 = vsyncadd [#allocation4], 4294967040 }
 0x11f   :  { %190 = vsyncpa [#allocation4], 1 }

</bundles_post_ra>
